<compile_context>
chip_gen: v7x
topology: tpu7x:2x2x1
jax: 0.10.0
libtpu: 0.0.40
codegen_flags: <defaults>
</compile_context>

<pallas_src>
import functools
import math

import jax
import jax.numpy as jnp
from jax import lax
from jax.experimental import pallas as pl
from jax.experimental.pallas import tpu as pltpu


# ------------------------------- helpers ------------------------------------


def _gelu_exact(x):
    # torch.nn.GELU() default: exact erf-based GELU.
    return 0.5 * x * (1.0 + lax.erf(x / jnp.sqrt(2.0).astype(x.dtype)))


def _row_tile(m):
    """Largest row tile (multiple of 8 sublanes, <= 512) that evenly divides m."""
    for t in (512, 256, 128, 64, 32, 16, 8):
        if m % t == 0:
            return t
    return m  # ragged / tiny: single full block (legal: equals the full array dim)


_PARAMS_1D = pltpu.CompilerParams(
    dimension_semantics=("parallel",),          # row tiles / batch items independent
    vmem_limit_bytes=32 * 1024 * 1024,          # safe on v5e/v6e (128 MiB) and v7x (64 MiB)
)


# ------------------------------- kernels ------------------------------------


def _linear_kernel(x_ref, w_ref, b_ref, o_ref):
    """o = x @ w + b on one (tm, K) x (K, N) tile (QKV / Q / KV projections)."""
    acc = jnp.dot(x_ref[...], w_ref[...], preferred_element_type=jnp.float32)
    o_ref[...] = (acc + b_ref[...]).astype(o_ref.dtype)


def _attention_block_kernel(q_ref, k_ref, v_ref, res_ref, wo_ref, bo_ref,
                            g_ref, beta_ref, o_ref, *, scale, eps):
    """Fused multi-head attention tail for one batch element.

      q_ref: (H, Sq, dh)   k_ref/v_ref: (H, Sk, dh)
      res_ref/o_ref: (1, Sq, D)   wo_ref: (H, dh, D)   bo/g/beta: (1, D)

    Computes  LayerNorm( concat_h(softmax(q_h k_h^T * scale) v_h) @ Wo + bo + res ).
    Heads are merged by accumulating ctx_h @ Wo[h] — no lane-dim reshape in-kernel.
    (attention-prob dropout and hidden dropout are identity in eval mode)
    """
    num_heads = q_ref.shape[0]
    acc = res_ref[0] + bo_ref[...]                       # (Sq, D)
    for h in range(num_heads):                           # static, unrolled
        qh = q_ref[h]                                    # (Sq, dh)
        kh = k_ref[h]                                    # (Sk, dh)
        vh = v_ref[h]                                    # (Sk, dh)
        s = lax.dot_general(qh, kh, (((1,), (1,)), ((), ())),
                            preferred_element_type=jnp.float32) * scale
        s = s - jnp.max(s, axis=-1, keepdims=True)
        p = jnp.exp(s)
        p = p / jnp.sum(p, axis=-1, keepdims=True)
        ctx = jnp.dot(p, vh, preferred_element_type=jnp.float32)        # (Sq, dh)
        acc = acc + jnp.dot(ctx, wo_ref[h], preferred_element_type=jnp.float32)
    mean = jnp.mean(acc, axis=-1, keepdims=True)
    var = jnp.mean(jnp.square(acc - mean), axis=-1, keepdims=True)
    hn = (acc - mean) * lax.rsqrt(var + eps)
    o_ref[0] = (hn * g_ref[...] + beta_ref[...]).astype(o_ref.dtype)


def _ffn_kernel(x_ref, wi_ref, bi_ref, wo_ref, bo_ref, g_ref, beta_ref, o_ref, *, eps):
    """BertIntermediate + BertOutput fused: LN(gelu(x@Wi+bi)@Wo + bo + x)."""
    x = x_ref[...]
    h1 = jnp.dot(x, wi_ref[...], preferred_element_type=jnp.float32) + bi_ref[...]
    h1 = _gelu_exact(h1)
    h2 = jnp.dot(h1, wo_ref[...], preferred_element_type=jnp.float32) + bo_ref[...] + x
    mean = jnp.mean(h2, axis=-1, keepdims=True)
    var = jnp.mean(jnp.square(h2 - mean), axis=-1, keepdims=True)
    hn = (h2 - mean) * lax.rsqrt(var + eps)
    o_ref[...] = (hn * g_ref[...] + beta_ref[...]).astype(o_ref.dtype)


# ------------------------------- wrappers ------------------------------------


def linear_pallas(x, w, b):
    """x: (M, K) f32, w: (K, N), b: (N,) -> (M, N)."""
    m, k = x.shape
    _, n = w.shape
    tm = _row_tile(m)
    return pl.pallas_call(
        _linear_kernel,
        out_shape=jax.ShapeDtypeStruct((m, n), jnp.float32),
        grid=(m // tm,),
        in_specs=[
            pl.BlockSpec((tm, k), lambda i: (i, 0)),
            pl.BlockSpec((k, n), lambda i: (0, 0)),
            pl.BlockSpec((1, n), lambda i: (0, 0)),
        ],
        out_specs=pl.BlockSpec((tm, n), lambda i: (i, 0)),
        compiler_params=_PARAMS_1D,
    )(x, w, b.reshape(1, n))


def attention_block_pallas(q, k, v, residual, wo, bo, gamma, beta, num_heads, eps):
    """Fused MHA + output projection + residual + LayerNorm.

    q/residual: (B, Sq, D), k/v: (B, Sk, D) -> (B, Sq, D).  Grid over B.
    Head split is XLA glue so the kernel never slices the lane dim at sub-128 offsets.
    """
    b, sq, d = q.shape
    _, sk, _ = k.shape
    dh = d // num_heads
    scale = 1.0 / math.sqrt(dh)

    def split_heads(x, s):
        # (B, S, D) -> (B*H, S, dh); kernel blocks are exactly (H, S, dh).
        return (x.reshape(b, s, num_heads, dh)
                 .transpose(0, 2, 1, 3)
                 .reshape(b * num_heads, s, dh))

    qh, kh, vh = split_heads(q, sq), split_heads(k, sk), split_heads(v, sk)
    wo_h = wo.reshape(num_heads, dh, d)

    return pl.pallas_call(
        functools.partial(_attention_block_kernel, scale=scale, eps=eps),
        out_shape=jax.ShapeDtypeStruct((b, sq, d), jnp.float32),
        grid=(b,),
        in_specs=[
            pl.BlockSpec((num_heads, sq, dh), lambda i: (i, 0, 0)),
            pl.BlockSpec((num_heads, sk, dh), lambda i: (i, 0, 0)),
            pl.BlockSpec((num_heads, sk, dh), lambda i: (i, 0, 0)),
            pl.BlockSpec((1, sq, d), lambda i: (i, 0, 0)),
            pl.BlockSpec((num_heads, dh, d), lambda i: (0, 0, 0)),
            pl.BlockSpec((1, d), lambda i: (0, 0)),
            pl.BlockSpec((1, d), lambda i: (0, 0)),
            pl.BlockSpec((1, d), lambda i: (0, 0)),
        ],
        out_specs=pl.BlockSpec((1, sq, d), lambda i: (i, 0, 0)),
        compiler_params=_PARAMS_1D,
    )(qh, kh, vh, residual, wo_h, bo.reshape(1, d),
      gamma.reshape(1, d), beta.reshape(1, d))


def ffn_pallas(x, wi, bi, wo, bo, gamma, beta, eps):
    """LayerNorm(gelu(x @ wi + bi) @ wo + bo + x).  x: (M, D)."""
    m, d = x.shape
    inter = wi.shape[1]
    tm = _row_tile(m)
    return pl.pallas_call(
        functools.partial(_ffn_kernel, eps=eps),
        out_shape=jax.ShapeDtypeStruct((m, d), jnp.float32),
        grid=(m // tm,),
        in_specs=[
            pl.BlockSpec((tm, d), lambda i: (i, 0)),
            pl.BlockSpec((d, inter), lambda i: (0, 0)),
            pl.BlockSpec((1, inter), lambda i: (0, 0)),
            pl.BlockSpec((inter, d), lambda i: (0, 0)),
            pl.BlockSpec((1, d), lambda i: (0, 0)),
            pl.BlockSpec((1, d), lambda i: (0, 0)),
            pl.BlockSpec((1, d), lambda i: (0, 0)),
        ],
        out_specs=pl.BlockSpec((tm, d), lambda i: (i, 0)),
        compiler_params=_PARAMS_1D,
    )(x, wi, bi.reshape(1, inter), wo, bo.reshape(1, d),
      gamma.reshape(1, d), beta.reshape(1, d))


# ------------------------------- model ---------------------------------------


class Config:
    hidden_size = 32
    num_attention_heads = 4
    intermediate_size = 64
    num_hidden_layers = 2
    layer_norm_eps = 1e-12
    attention_dropout = 0.0     # dropout is identity in eval-mode forward
    hidden_dropout = 0.0
    add_cross_attention = True  # BertLayer.forward always runs the cross-attention block


def _init_linear(key, fan_in, fan_out):
    kw, kb = jax.random.split(key)
    bound = 1.0 / math.sqrt(fan_in)                     # torch nn.Linear default init range
    w = jax.random.uniform(kw, (fan_in, fan_out), jnp.float32, -bound, bound)
    b = jax.random.uniform(kb, (fan_out,), jnp.float32, -bound, bound)
    return w, b


def init_params(config, key):
    d, inter = config.hidden_size, config.intermediate_size
    params = []
    for _ in range(config.num_hidden_layers):
        keys = jax.random.split(key, 8)
        key = keys[0]
        sa_wqkv, sa_bqkv = _init_linear(keys[1], d, 3 * d)    # fused Q+K+V projection
        sa_wo, sa_bo = _init_linear(keys[2], d, d)
        ca_wq, ca_bq = _init_linear(keys[3], d, d)
        ca_wkv, ca_bkv = _init_linear(keys[4], d, 2 * d)      # fused K+V projection
        ca_wo, ca_bo = _init_linear(keys[5], d, d)
        ff_wi, ff_bi = _init_linear(keys[6], d, inter)
        ff_wo, ff_bo = _init_linear(keys[7], inter, d)
        params.append(dict(
            sa_wqkv=sa_wqkv, sa_bqkv=sa_bqkv, sa_wo=sa_wo, sa_bo=sa_bo,
            sa_ln_g=jnp.ones((d,), jnp.float32), sa_ln_b=jnp.zeros((d,), jnp.float32),
            ca_wq=ca_wq, ca_bq=ca_bq, ca_wkv=ca_wkv, ca_bkv=ca_bkv,
            ca_wo=ca_wo, ca_bo=ca_bo,
            ca_ln_g=jnp.ones((d,), jnp.float32), ca_ln_b=jnp.zeros((d,), jnp.float32),
            ff_wi=ff_wi, ff_bi=ff_bi, ff_wo=ff_wo, ff_bo=ff_bo,
            ff_ln_g=jnp.ones((d,), jnp.float32), ff_ln_b=jnp.zeros((d,), jnp.float32),
        ))
    return params


def bert_layer_forward(layer, h, enc, num_heads, eps):
    b, s, d = h.shape
    _, se, _ = enc.shape
    h2 = h.reshape(b * s, d)
    enc2 = enc.reshape(b * se, d)

    # --- self-attention: fused QKV projection + fused attention/out-proj/residual/LN
    qkv = linear_pallas(h2, layer["sa_wqkv"], layer["sa_bqkv"]).reshape(b, s, 3 * d)
    attn = attention_block_pallas(
        qkv[..., :d], qkv[..., d:2 * d], qkv[..., 2 * d:], h,
        layer["sa_wo"], layer["sa_bo"], layer["sa_ln_g"], layer["sa_ln_b"],
        num_heads, eps)

    # --- cross-attention (queries from attn, keys/values from encoder states)
    qc = linear_pallas(attn.reshape(b * s, d),
                       layer["ca_wq"], layer["ca_bq"]).reshape(b, s, d)
    kvc = linear_pallas(enc2, layer["ca_wkv"], layer["ca_bkv"]).reshape(b, se, 2 * d)
    cross = attention_block_pallas(
        qc, kvc[..., :d], kvc[..., d:], attn,
        layer["ca_wo"], layer["ca_bo"], layer["ca_ln_g"], layer["ca_ln_b"],
        num_heads, eps)

    # --- feed-forward: one fused kernel (GELU matmul + output matmul + residual + LN)
    out = ffn_pallas(cross.reshape(b * s, d),
                     layer["ff_wi"], layer["ff_bi"], layer["ff_wo"], layer["ff_bo"],
                     layer["ff_ln_g"], layer["ff_ln_b"], eps)
    return out.reshape(b, s, d)


def bert_encoder_forward(params, hidden_states, encoder_hidden_states, config):
    # TODO(synk): use_cache / past_key_values and output_attentions bookkeeping are
    # not materialized; only last_hidden_state is returned (dropout = eval identity).
    h = hidden_states
    for layer in params:
        h = bert_layer_forward(layer, h, encoder_hidden_states,
                               config.num_attention_heads, config.layer_norm_eps)
    return h


# --------------------------- pure-JAX reference -------------------------------


def _attention_ref(q, k, v, num_heads):
    b, sq, d = q.shape
    hd = d // num_heads
    qh = q.reshape(b, sq, num_heads, hd).transpose(0, 2, 1, 3)
    kh = k.reshape(b, -1, num_heads, hd).transpose(0, 2, 1, 3)
    vh = v.reshape(b, -1, num_heads, hd).transpose(0, 2, 1, 3)
    s = jnp.einsum("bhqd,bhkd->bhqk", qh, kh,
                   precision=jax.lax.Precision.HIGHEST) / math.sqrt(hd)
    p = jax.nn.softmax(s, axis=-1)
    ctx = jnp.einsum("bhqk,bhkd->bhqd", p, vh, precision=jax.lax.Precision.HIGHEST)
    return ctx.transpose(0, 2, 1, 3).reshape(b, sq, d)


def _lin_ref(x, w, b):
    return jnp.dot(x, w, precision=jax.lax.Precision.HIGHEST) + b


def _ln_ref(x, g, b, eps):
    m = jnp.mean(x, axis=-1, keepdims=True)
    v = jnp.mean(jnp.square(x - m), axis=-1, keepdims=True)
    return (x - m) / jnp.sqrt(v + eps) * g + b


def bert_encoder_reference(params, hidden_states, encoder_hidden_states, config):
    d = config.hidden_size
    nh = config.num_attention_heads
    eps = config.layer_norm_eps
    h = hidden_states
    for p in params:
        qkv = _lin_ref(h, p["sa_wqkv"], p["sa_bqkv"])
        ctx = _attention_ref(qkv[..., :d], qkv[..., d:2 * d], qkv[..., 2 * d:], nh)
        attn = _ln_ref(_lin_ref(ctx, p["sa_wo"], p["sa_bo"]) + h,
                       p["sa_ln_g"], p["sa_ln_b"], eps)
        qc = _lin_ref(attn, p["ca_wq"], p["ca_bq"])
        kvc = _lin_ref(encoder_hidden_states, p["ca_wkv"], p["ca_bkv"])
        ctxc = _attention_ref(qc, kvc[..., :d], kvc[..., d:], nh)
        cross = _ln_ref(_lin_ref(ctxc, p["ca_wo"], p["ca_bo"]) + attn,
                        p["ca_ln_g"], p["ca_ln_b"], eps)
        inter = _gelu_exact(_lin_ref(cross, p["ff_wi"], p["ff_bi"]))
        h = _ln_ref(_lin_ref(inter, p["ff_wo"], p["ff_bo"]) + cross,
                    p["ff_ln_g"], p["ff_ln_b"], eps)
    return h


# --------------------------------- main ---------------------------------------

if __name__ == "__main__":
    cfg = Config()
    key = jax.random.PRNGKey(0)
    key, kx, ke, kp = jax.random.split(key, 4)

    batch, seq, enc_seq = 2, 8, 8
    hidden_states = jax.random.normal(kx, (batch, seq, cfg.hidden_size), jnp.float32)
    encoder_hidden_states = jax.random.normal(
        ke, (batch, enc_seq, cfg.hidden_size), jnp.float32)
    params = init_params(cfg, kp)

    out = jax.block_until_ready(
        bert_encoder_forward(params, hidden_states, encoder_hidden_states, cfg))
    ref = jax.block_until_ready(
        bert_encoder_reference(params, hidden_states, encoder_hidden_states, cfg))

    assert out.shape == ref.shape, (out.shape, ref.shape)
    max_err = float(jnp.max(jnp.abs(out - ref)))
    # Tolerance covers MXU f32 multi-pass vs XLA HIGHEST-precision matmul differences.
    assert max_err < 2e-2, max_err
    print("KERNEL_OK")
</pallas_src>

<mosaic_0001>
module attributes {stable_mosaic.version = 11 : i64} {
  func.func @_linear_kernel(%arg0: i32, %arg1: memref<16x32xf32, #tpu.memory_space<vmem>>, %arg2: memref<32x96xf32, #tpu.memory_space<vmem>>, %arg3: memref<1x96xf32, #tpu.memory_space<vmem>>, %arg4: memref<16x96xf32, #tpu.memory_space<vmem>>) attributes {dimension_semantics = [#tpu.dimension_semantics<parallel>], iteration_bounds = array<i64: 1>, scalar_prefetch = 0 : i64, scratch_operands = 0 : i64, tpu.core_type = #tpu.core_type<tc>, window_params = [{transform_indices = @transform_0, window_bounds = array<i64: 16, 32>}, {pipeline_mode = #tpu.pipeline_mode<synchronous>, transform_indices = @transform_1, window_bounds = array<i64: 32, 96>}, {pipeline_mode = #tpu.pipeline_mode<synchronous>, transform_indices = @transform_2, window_bounds = array<i64: 1, 96>}, {transform_indices = @transform_3, window_bounds = array<i64: 16, 96>}]} {
    %c0 = arith.constant 0 : index
    %c0_0 = arith.constant 0 : index
    %0 = vector.load %arg1[%c0, %c0_0] : memref<16x32xf32, #tpu.memory_space<vmem>>, vector<16x32xf32>
    %c0_1 = arith.constant 0 : index
    %c0_2 = arith.constant 0 : index
    %1 = vector.load %arg2[%c0_1, %c0_2] : memref<32x96xf32, #tpu.memory_space<vmem>>, vector<32x96xf32>
    %cst = arith.constant dense<0.000000e+00> : vector<16x96xf32>
    %2 = tpu.matmul %0, %1, %cst {dimension_numbers = #tpu.dot_dimension_numbers<[1], [0], [0], [1], [0, 0, 1, 1], [], []>} : vector<16x32xf32>, vector<32x96xf32>, vector<16x96xf32> -> vector<16x96xf32>
    %c0_3 = arith.constant 0 : index
    %c0_4 = arith.constant 0 : index
    %3 = vector.load %arg3[%c0_3, %c0_4] : memref<1x96xf32, #tpu.memory_space<vmem>>, vector<1x96xf32>
    %4 = vector.broadcast %3 : vector<1x96xf32> to vector<16x96xf32>
    %5 = arith.addf %2, %4 : vector<16x96xf32>
    %c0_5 = arith.constant 0 : index
    %c0_6 = arith.constant 0 : index
    %6 = vector.load %arg4[%c0_5, %c0_6] : memref<16x96xf32, #tpu.memory_space<vmem>>, vector<16x96xf32>
    tpu.vector_store %arg4[%c0_5, %c0_6], %5 {strides = array<i32>} : memref<16x96xf32, #tpu.memory_space<vmem>>, vector<16x96xf32>,
    return
  }
  func.func @transform_0(%arg0: i32) -> (i32, i32) {
    %c0_i32 = arith.constant 0 : i32
    %c0_i32_0 = arith.constant 0 : i32
    return %arg0, %c0_i32 : i32, i32
  }
  func.func @transform_1(%arg0: i32) -> (i32, i32) {
    %c0_i32 = arith.constant 0 : i32
    %c0_i32_0 = arith.constant 0 : i32
    %c0_i32_1 = arith.constant 0 : i32
    return %c0_i32, %c0_i32_0 : i32, i32
  }
  func.func @transform_2(%arg0: i32) -> (i32, i32) {
    %c0_i32 = arith.constant 0 : i32
    %c0_i32_0 = arith.constant 0 : i32
    %c0_i32_1 = arith.constant 0 : i32
    return %c0_i32, %c0_i32_0 : i32, i32
  }
  func.func @transform_3(%arg0: i32) -> (i32, i32) {
    %c0_i32 = arith.constant 0 : i32
    %c0_i32_0 = arith.constant 0 : i32
    return %arg0, %c0_i32 : i32, i32
  }
}

</mosaic_0001>

<bundles_post_ra>
// kernel: tpu_custom_call.1
= control target key start
LH: loop header
LB: loop body
LE: loop exit
PB: predicated region body
PF: predicated region fallthrough
CT: control target
= control target key end

     0   :  { %8 = vsyncpa [#allocation3], 0  ;;  %s337_s0 = inlined_call_operand.hbm [shape: f32[16,32], index: 0, kind: input, shape index: {}]   ;;  %s338_s1 = inlined_call_operand.hbm [shape: f32[32,96], index: 1, kind: input, shape index: {}]   ;;  %s339_s2 = inlined_call_operand.vmem [shape: f32[1,96], index: 2, kind: input, shape index: {}]   ;;  %s340_s3 = inlined_call_operand.hbm [shape: f32[16,96], index: 3, kind: output, shape index: {}]  }
   0x1   :  { %9 = vsyncpa [#allocation6], 0 }
   0x2   :  { %10 = vsyncpa [#allocation4], 0  ;;  %s264_s12 = smov [#allocation2]   ;;  %s192_s16 = scalar_lea.hbm %s337_s0, 256 }
   0x3   :  { %s16_s13 = sshll.u32 %s264_s12, 4  ;;  %p193_p0 = scmp.ne.s32.totalorder %s337_s0, %s192_s16  ;;  %s17_s13 = int_to_ptr.vmem [resolvable:$true] %s16_s13 }
   0x4   :  { %p196_p1 = scmp.lt.u32.totalorder %s192_s16, %s337_s0 }
   0x6   :  { %p198_p2 = pnand %p196_p1, %p193_p0 }
   0x8   :  { %201 = shalt.err (!%p198_p2)
}
   0x9   :  { %s202_s21 = scalar_lea.vmem %s17_s13, 256  ;;  %p207_p4 = scmp.lt.s32.totalorder %s17_s13, %s17_s13 }
   0xa   :  { %p203_p3 = scmp.ne.s32.totalorder %s17_s13, %s202_s21  ;;  %p208_p5 = scmp.lt.s32.totalorder %s202_s21, %s202_s21 }
   0xc   :  { %p209_p6 = por %p208_p5, %p207_p4 }
   0xe   :  { %p210_p7 = pnand %p209_p6, %p203_p3 }
  0x10   :  { %213 = shalt.err (!%p210_p7)
}
  0x11   :  { %s265_s22 = smov 128   ;;  %s266_s23 = smov 8  }
  0x12   :  { %22 = dma.hbm_to_vmem [thread:$0]  %s337_s0, 256, %s17_s13, [#allocation3], %s265_s22, %s265_s22, %s266_s23  }
  0x13   :  { %s267_s26 = smov [#allocation5]   ;;  %s214_s30 = scalar_lea.hbm %s338_s1, 512 }
  0x14   :  { %s28_s27 = sshll.u32 %s267_s26, 4  ;;  %p215_p8 = scmp.ne.s32.totalorder %s338_s1, %s214_s30  ;;  %s29_s27 = int_to_ptr.vmem [resolvable:$true] %s28_s27 }
  0x15   :  { %p218_p9 = scmp.lt.u32.totalorder %s214_s30, %s338_s1 }
  0x17   :  { %p220_p10 = pnand %p218_p9, %p215_p8 }
  0x19   :  { %223 = shalt.err (!%p220_p10)
}
  0x1a   :  { %s224_s8 = scalar_lea.vmem %s29_s27, 512  ;;  %p229_p12 = scmp.lt.s32.totalorder %s29_s27, %s29_s27 }
  0x1b   :  { %p225_p11 = scmp.ne.s32.totalorder %s29_s27, %s224_s8  ;;  %p230_p13 = scmp.lt.s32.totalorder %s224_s8, %s224_s8 }
  0x1d   :  { %p231_p0 = por %p230_p13, %p229_p12 }
  0x1f   :  { %p232_p1 = pnand %p231_p0, %p225_p11 }
  0x21   :  { %235 = shalt.err (!%p232_p1)
}
  0x22   :  { %34 = dma.hbm_to_vmem [thread:$0]  %s338_s1, 512, %s29_s27, [#allocation6], %s265_s22, %s265_s22, %s266_s23  }
  0x23   :  { %258 = dma.done.wait [#allocation3], 256  }
  0x24   :  { %259 = vsyncadd [#allocation3], 4294967040 }
  0x25   :  { %260 = dma.done.wait [#allocation6], 512  }
  0x26   :  { %261 = vsyncadd [#allocation6], 4294966784  ;;  %vm56_vm0 = vcmask 261120   ;;  %v45_v0 = vld [vmem:[#allocation5] sm:$0xff]  ;;  %v46_v1 = vld [vmem:[#allocation5 + $0x8] sm:$0xff]  ;;  %s268_s11 = smov [#allocation7]  }
  0x27   :  { %v47_v2 = vld [vmem:[#allocation5 + $0x10] sm:$0xff]  ;;  %v179_v3 = vpack.c.bf16 %v46_v1, %v45_v0  ;;  %v48_v4 = vld [vmem:[#allocation5 + $0x18] sm:$0xff]  ;;  %s146_s12 = sshll.u32 %s268_s11, 4  ;;  %vm138_vm1 = vcmask 785408   ;;  %s147_s12 = int_to_ptr.vmem [resolvable:$true] %s146_s12 }
  0x28   :  { %v43_v5 = vld [vmem:[#allocation2] sm:$0xff]  ;;  %v183_v6 = vpack.c.bf16 %v48_v4, %v47_v2  ;;  %v44_v7 = vld [vmem:[#allocation2 + $0x8] sm:$0xff]  ;;  %s236_s13 = scalar_lea.vmem %s147_s12, 256  ;;  %p241_p3 = scmp.lt.s32.totalorder %s147_s12, %s147_s12 }
  0x29   :  { %176 = vmatprep.mubr.msk.f32.mxu0 %vm56_vm0, %v43_v5  ;;  %180 = vmatprep.subr.bf16.mxu0 %v179_v3  ;;  %v159_v8 = vld [vmem:[%s339_s2] ss:$0 sm:$0xff]  ;;  %p237_p2 = scmp.ne.s32.totalorder %s147_s12, %s236_s13  ;;  %p242_p4 = scmp.lt.s32.totalorder %s236_s13, %s236_s13 }
  0x2a   :  { %182 = vmatpush3.bf16.msra.mxu0 %v179_v3 }
  0x2b   :  { %184 = vmatprep.subr.bf16.mxu0 %v183_v6  ;;  %p243_p5 = por %p242_p4, %p241_p3 }
  0x2d   :  { %p244_p6 = pnand %p243_p5, %p237_p2 }
  0x2e   :  { %186 = vmatpush3.bf16.msra.mxu0 %v183_v6 }
  0x31   :  { %177 = vmatmul.mubr.msk.f32.vlgmr.msra.gmra.mrb[0].mxu0 %vm56_vm0, %v44_v7 }
 0x104   :  { %v178_v9 = vpop.f32.mrb[0].mxu0 }
 0x105   :  { %v135_v10 = vadd.f32 %v178_v9, %v159_v8  ;;  %v129_v11 = vpop.f32.mrb[1].mxu0 }
 0x106   :  { %v130_v12 = vadd.f32 %v159_v8, %v129_v11 }
 0x107   :  { %140 = vst.msk [vmem:[#allocation7 + $0x8] sm:$0xff] %vm138_vm1, %v135_v10 }
 0x108   :  { %139 = vst.msk [vmem:[#allocation7] sm:$0xff] %vm138_vm1, %v130_v12 }
 0x109   :  { %247 = shalt.err (!%p244_p6)
}
 0x10a   :  { %s248_s2 = scalar_lea.hbm %s340_s3, 256 }
 0x10b   :  { %p249_p7 = scmp.ne.s32.totalorder %s340_s3, %s248_s2  ;;  %p252_p8 = scmp.lt.u32.totalorder %s248_s2, %s340_s3 }
 0x10d   :  { %p254_p9 = pnand %p252_p8, %p249_p7 }
 0x10f   :  { %257 = shalt.err (!%p254_p9)
}
 0x110   :  { %152 = dma.vmem_to_hbm [thread:$0]  %s147_s12, 256, %s340_s3, [#allocation4], %s265_s22, %s265_s22, %s266_s23  }
 0x111   :  { %262 = dma.done.wait [#allocation4], 256  }
 0x112   :  { %263 = vsyncadd [#allocation4], 4294967040 }
 0x113   :  { %156 = vsyncpa [#allocation3], 1 }
 0x114   :  { %157 = vsyncpa [#allocation6], 1 }
 0x115   :  { %158 = vsyncpa [#allocation4], 1 }

</bundles_post_ra>
